<compile_context>
chip_gen: v7x
topology: tpu7x:2x2x1
jax: 0.10.0
libtpu: 0.0.40
codegen_flags: <defaults>
</compile_context>

<pallas_src>
import jax
import jax.numpy as jnp
from jax.experimental import pallas as pl
from jax.experimental.pallas import tpu as pltpu


LANE = 128  # TPU lane width; the tiny action head is padded up to this.


def _round_up(x, m):
    return ((x + m - 1) // m) * m


def _mlp_kernel(obs_ref, w1_ref, b1_ref, w2_ref, b2_ref, w3_ref, b3_ref, q_ref):
    # obs / weights are bf16 (MXU inputs), biases are f32, accumulation is f32.
    x = obs_ref[...]
    # layer 1: Linear(state_dim -> hidden) + ReLU   (bias+ReLU in f32)
    h1 = jnp.dot(x, w1_ref[...], preferred_element_type=jnp.float32) + b1_ref[...]
    h1 = jnp.maximum(h1, 0.0).astype(jnp.bfloat16)
    # layer 2: Linear(hidden -> hidden) + ReLU
    h2 = jnp.dot(h1, w2_ref[...], preferred_element_type=jnp.float32) + b2_ref[...]
    h2 = jnp.maximum(h2, 0.0).astype(jnp.bfloat16)
    # output head: Linear(hidden -> action_pad) -- lane-dense (128-wide) store
    q = jnp.dot(h2, w3_ref[...], preferred_element_type=jnp.float32) + b3_ref[...]
    q_ref[...] = q.astype(q_ref.dtype)


def net_forward(obs, params, action_dim, *, tb=512):
    """obs: (B, state_dim) float32. params: dict with bf16 weights ((in, out) layout,
    head zero-padded to 128 lanes) and f32 biases (1, out). Returns (B, action_dim) f32."""
    w1, b1 = params["w1"], params["b1"]
    w2, b2 = params["w2"], params["b2"]
    w3, b3 = params["w3"], params["b3"]

    B, S = obs.shape
    H = w1.shape[1]
    A_pad = w3.shape[1]

    # Batch tile: multiple of 8 sublanes; pad the batch to a whole number of tiles.
    TB = min(tb, _round_up(B, 8))
    Bp = _round_up(B, TB)

    obs_bf16 = obs.astype(jnp.bfloat16)
    if Bp != B:
        obs_bf16 = jnp.pad(obs_bf16, ((0, Bp - B), (0, 0)))

    grid = (Bp // TB,)
    const = lambda i: (0, 0)  # weights/biases: VMEM-resident across grid steps

    flops = 2 * Bp * (S * H + H * H + H * A_pad)
    bytes_accessed = (
        obs_bf16.size * 2
        + (w1.size + w2.size + w3.size) * 2
        + (b1.size + b2.size + b3.size) * 4
        + Bp * A_pad * 4
    )

    q_full = pl.pallas_call(
        _mlp_kernel,
        out_shape=jax.ShapeDtypeStruct((Bp, A_pad), jnp.float32),
        grid=grid,
        in_specs=[
            pl.BlockSpec((TB, S), lambda i: (i, 0)),   # obs tile (pipelined)
            pl.BlockSpec((S, H), const),               # w1
            pl.BlockSpec((1, H), const),               # b1
            pl.BlockSpec((H, H), const),               # w2
            pl.BlockSpec((1, H), const),               # b2
            pl.BlockSpec((H, A_pad), const),           # w3 (padded head)
            pl.BlockSpec((1, A_pad), const),           # b3 (padded head)
        ],
        out_specs=pl.BlockSpec((TB, A_pad), lambda i: (i, 0)),  # lane-dense output
        compiler_params=pltpu.CompilerParams(
            dimension_semantics=("parallel",),  # shards batch tiles across v7x TCs
        ),
        cost_estimate=pl.CostEstimate(
            flops=flops, transcendentals=0, bytes_accessed=bytes_accessed
        ),
    )(obs_bf16, w1, b1, w2, b2, w3, b3)

    return q_full[:B, :action_dim]


def init_params(key, state_dim, action_dim, hidden_dim=256):
    """PyTorch nn.Linear-style init (U[-1/sqrt(fan_in), +1/sqrt(fan_in)]).
    Weights stored as (in_features, out_features) bf16; biases (1, out) f32.
    The output head is zero-padded to 128 lanes."""
    ks = jax.random.split(key, 6)

    def lin(kw, kb, fan_in, fan_out):
        bound = 1.0 / jnp.sqrt(jnp.float32(fan_in))
        w = jax.random.uniform(kw, (fan_in, fan_out), jnp.float32, -bound, bound)
        b = jax.random.uniform(kb, (1, fan_out), jnp.float32, -bound, bound)
        return w, b

    w1, b1 = lin(ks[0], ks[1], state_dim, hidden_dim)
    w2, b2 = lin(ks[2], ks[3], hidden_dim, hidden_dim)
    w3, b3 = lin(ks[4], ks[5], hidden_dim, action_dim)

    a_pad = _round_up(max(action_dim, LANE), LANE)
    w3p = jnp.zeros((hidden_dim, a_pad), jnp.float32).at[:, :action_dim].set(w3)
    b3p = jnp.zeros((1, a_pad), jnp.float32).at[:, :action_dim].set(b3)

    return dict(
        w1=w1.astype(jnp.bfloat16), b1=b1,
        w2=w2.astype(jnp.bfloat16), b2=b2,
        w3=w3p.astype(jnp.bfloat16), b3=b3p,
    )


def net_forward_ref(obs, params, action_dim):
    """Pure-JAX reference mirroring the kernel's bf16-in / f32-accumulate math."""
    w1 = params["w1"].astype(jnp.float32)
    w2 = params["w2"].astype(jnp.float32)
    w3 = params["w3"].astype(jnp.float32)
    b1, b2, b3 = params["b1"], params["b2"], params["b3"]

    x = obs.astype(jnp.bfloat16).astype(jnp.float32)
    h1 = jnp.maximum(x @ w1 + b1, 0.0)
    h1 = h1.astype(jnp.bfloat16).astype(jnp.float32)
    h2 = jnp.maximum(h1 @ w2 + b2, 0.0)
    h2 = h2.astype(jnp.bfloat16).astype(jnp.float32)
    q = h2 @ w3 + b3
    return q[:, :action_dim]


if __name__ == "__main__":
    # Small but representative shapes: batch=256 observations of state_dim=4,
    # hidden_dim=256 (module default), action_dim=2. tb=128 -> 2 grid steps.
    batch, state_dim, action_dim, hidden_dim = 256, 4, 2, 256

    key = jax.random.PRNGKey(0)
    k_obs, k_params = jax.random.split(key)
    obs = jax.random.normal(k_obs, (batch, state_dim), jnp.float32)
    params = init_params(k_params, state_dim, action_dim, hidden_dim)

    q_values = net_forward(obs, params, action_dim, tb=128)
    q_values = jax.block_until_ready(q_values)

    q_ref = net_forward_ref(obs, params, action_dim)
    assert q_values.shape == (batch, action_dim)
    assert jnp.allclose(q_values, q_ref, atol=2e-3, rtol=2e-3)

    print("KERNEL_OK")
</pallas_src>

<mosaic_0001>
module attributes {stable_mosaic.version = 11 : i64} {
  func.func @_mlp_kernel(%arg0: i32, %arg1: memref<128x4xbf16, #tpu.memory_space<vmem>>, %arg2: memref<4x256xbf16, #tpu.memory_space<vmem>>, %arg3: memref<1x256xf32, #tpu.memory_space<vmem>>, %arg4: memref<256x256xbf16, #tpu.memory_space<vmem>>, %arg5: memref<1x256xf32, #tpu.memory_space<vmem>>, %arg6: memref<256x128xbf16, #tpu.memory_space<vmem>>, %arg7: memref<1x128xf32, #tpu.memory_space<vmem>>, %arg8: memref<128x128xf32, #tpu.memory_space<vmem>>) attributes {dimension_semantics = [#tpu.dimension_semantics<parallel>], iteration_bounds = array<i64: 2>, scalar_prefetch = 0 : i64, scratch_operands = 0 : i64, tpu.core_type = #tpu.core_type<tc>, window_params = [{transform_indices = @transform_0, window_bounds = array<i64: 128, 4>}, {pipeline_mode = #tpu.pipeline_mode<synchronous>, transform_indices = @transform_1, window_bounds = array<i64: 4, 256>}, {pipeline_mode = #tpu.pipeline_mode<synchronous>, transform_indices = @transform_2, window_bounds = array<i64: 1, 256>}, {pipeline_mode = #tpu.pipeline_mode<synchronous>, transform_indices = @transform_3, window_bounds = array<i64: 256, 256>}, {pipeline_mode = #tpu.pipeline_mode<synchronous>, transform_indices = @transform_4, window_bounds = array<i64: 1, 256>}, {pipeline_mode = #tpu.pipeline_mode<synchronous>, transform_indices = @transform_5, window_bounds = array<i64: 256, 128>}, {pipeline_mode = #tpu.pipeline_mode<synchronous>, transform_indices = @transform_6, window_bounds = array<i64: 1, 128>}, {transform_indices = @transform_7, window_bounds = array<i64: 128, 128>}]} {
    %c0 = arith.constant 0 : index
    %c0_0 = arith.constant 0 : index
    %0 = vector.load %arg1[%c0, %c0_0] : memref<128x4xbf16, #tpu.memory_space<vmem>>, vector<128x4xbf16>
    %c0_1 = arith.constant 0 : index
    %c0_2 = arith.constant 0 : index
    %1 = vector.load %arg2[%c0_1, %c0_2] : memref<4x256xbf16, #tpu.memory_space<vmem>>, vector<4x256xbf16>
    %cst = arith.constant dense<0.000000e+00> : vector<128x256xf32>
    %2 = tpu.matmul %0, %1, %cst {dimension_numbers = #tpu.dot_dimension_numbers<[1], [0], [0], [1], [0, 0, 1, 1], [], []>} : vector<128x4xbf16>, vector<4x256xbf16>, vector<128x256xf32> -> vector<128x256xf32>
    %c0_3 = arith.constant 0 : index
    %c0_4 = arith.constant 0 : index
    %3 = vector.load %arg3[%c0_3, %c0_4] : memref<1x256xf32, #tpu.memory_space<vmem>>, vector<1x256xf32>
    %4 = vector.broadcast %3 : vector<1x256xf32> to vector<128x256xf32>
    %5 = arith.addf %2, %4 : vector<128x256xf32>
    %cst_5 = arith.constant 0.000000e+00 : f32
    %6 = vector.broadcast %cst_5 : f32 to vector<128x256xf32>
    %7 = arith.maximumf %5, %6 : vector<128x256xf32>
    %8 = arith.truncf %7 : vector<128x256xf32> to vector<128x256xbf16>
    %c0_6 = arith.constant 0 : index
    %c0_7 = arith.constant 0 : index
    %9 = vector.load %arg4[%c0_6, %c0_7] : memref<256x256xbf16, #tpu.memory_space<vmem>>, vector<256x256xbf16>
    %cst_8 = arith.constant dense<0.000000e+00> : vector<128x256xf32>
    %10 = tpu.matmul %8, %9, %cst_8 {dimension_numbers = #tpu.dot_dimension_numbers<[1], [0], [0], [1], [0, 0, 1, 1], [], []>} : vector<128x256xbf16>, vector<256x256xbf16>, vector<128x256xf32> -> vector<128x256xf32>
    %c0_9 = arith.constant 0 : index
    %c0_10 = arith.constant 0 : index
    %11 = vector.load %arg5[%c0_9, %c0_10] : memref<1x256xf32, #tpu.memory_space<vmem>>, vector<1x256xf32>
    %12 = vector.broadcast %11 : vector<1x256xf32> to vector<128x256xf32>
    %13 = arith.addf %10, %12 : vector<128x256xf32>
    %cst_11 = arith.constant 0.000000e+00 : f32
    %14 = vector.broadcast %cst_11 : f32 to vector<128x256xf32>
    %15 = arith.maximumf %13, %14 : vector<128x256xf32>
    %16 = arith.truncf %15 : vector<128x256xf32> to vector<128x256xbf16>
    %c0_12 = arith.constant 0 : index
    %c0_13 = arith.constant 0 : index
    %17 = vector.load %arg6[%c0_12, %c0_13] : memref<256x128xbf16, #tpu.memory_space<vmem>>, vector<256x128xbf16>
    %cst_14 = arith.constant dense<0.000000e+00> : vector<128x128xf32>
    %18 = tpu.matmul %16, %17, %cst_14 {dimension_numbers = #tpu.dot_dimension_numbers<[1], [0], [0], [1], [0, 0, 1, 1], [], []>} : vector<128x256xbf16>, vector<256x128xbf16>, vector<128x128xf32> -> vector<128x128xf32>
    %c0_15 = arith.constant 0 : index
    %c0_16 = arith.constant 0 : index
    %19 = vector.load %arg7[%c0_15, %c0_16] : memref<1x128xf32, #tpu.memory_space<vmem>>, vector<1x128xf32>
    %20 = vector.broadcast %19 : vector<1x128xf32> to vector<128x128xf32>
    %21 = arith.addf %18, %20 : vector<128x128xf32>
    %c0_17 = arith.constant 0 : index
    %c0_18 = arith.constant 0 : index
    %22 = vector.load %arg8[%c0_17, %c0_18] : memref<128x128xf32, #tpu.memory_space<vmem>>, vector<128x128xf32>
    tpu.vector_store %arg8[%c0_17, %c0_18], %21 {strides = array<i32>} : memref<128x128xf32, #tpu.memory_space<vmem>>, vector<128x128xf32>,
    return
  }
  func.func @transform_0(%arg0: i32) -> (i32, i32) {
    %c0_i32 = arith.constant 0 : i32
    %c0_i32_0 = arith.constant 0 : i32
    return %arg0, %c0_i32 : i32, i32
  }
  func.func @transform_1(%arg0: i32) -> (i32, i32) {
    %c0_i32 = arith.constant 0 : i32
    %c0_i32_0 = arith.constant 0 : i32
    %c0_i32_1 = arith.constant 0 : i32
    return %c0_i32, %c0_i32_0 : i32, i32
  }
  func.func @transform_2(%arg0: i32) -> (i32, i32) {
    %c0_i32 = arith.constant 0 : i32
    %c0_i32_0 = arith.constant 0 : i32
    %c0_i32_1 = arith.constant 0 : i32
    return %c0_i32, %c0_i32_0 : i32, i32
  }
  func.func @transform_3(%arg0: i32) -> (i32, i32) {
    %c0_i32 = arith.constant 0 : i32
    %c0_i32_0 = arith.constant 0 : i32
    %c0_i32_1 = arith.constant 0 : i32
    return %c0_i32, %c0_i32_0 : i32, i32
  }
  func.func @transform_4(%arg0: i32) -> (i32, i32) {
    %c0_i32 = arith.constant 0 : i32
    %c0_i32_0 = arith.constant 0 : i32
    %c0_i32_1 = arith.constant 0 : i32
    return %c0_i32, %c0_i32_0 : i32, i32
  }
  func.func @transform_5(%arg0: i32) -> (i32, i32) {
    %c0_i32 = arith.constant 0 : i32
    %c0_i32_0 = arith.constant 0 : i32
    %c0_i32_1 = arith.constant 0 : i32
    return %c0_i32, %c0_i32_0 : i32, i32
  }
  func.func @transform_6(%arg0: i32) -> (i32, i32) {
    %c0_i32 = arith.constant 0 : i32
    %c0_i32_0 = arith.constant 0 : i32
    %c0_i32_1 = arith.constant 0 : i32
    return %c0_i32, %c0_i32_0 : i32, i32
  }
  func.func @transform_7(%arg0: i32) -> (i32, i32) {
    %c0_i32 = arith.constant 0 : i32
    %c0_i32_0 = arith.constant 0 : i32
    return %arg0, %c0_i32 : i32, i32
  }
}

</mosaic_0001>

<bundles_post_ra>
// kernel: tpu_custom_call.1
= control target key start
LH: loop header
LB: loop body
LE: loop exit
PB: predicated region body
PF: predicated region fallthrough
CT: control target
= control target key end

     0   :  { %12 = vsyncpa [#allocation3], 0  ;;  %s2032_s0 = inlined_call_operand.vmem [shape: bf16[256,4], index: 0, kind: input, shape index: {}]   ;;  %s2033_s1 = inlined_call_operand.vmem [shape: bf16[4,256], index: 1, kind: input, shape index: {}]   ;;  %s2034_s2 = inlined_call_operand.vmem [shape: f32[1,256], index: 2, kind: input, shape index: {}]   ;;  %s2035_s3 = inlined_call_operand.hbm [shape: bf16[256,256], index: 3, kind: input, shape index: {}]   ;;  %s2036_s4 = inlined_call_operand.vmem [shape: f32[1,256], index: 4, kind: input, shape index: {}]   ;;  %s2037_s5 = inlined_call_operand.vmem [shape: bf16[256,128], index: 5, kind: input, shape index: {}]   ;;  %s2038_s6 = inlined_call_operand.vmem [shape: f32[1,128], index: 6, kind: input, shape index: {}]   ;;  %s2039_s7 = inlined_call_operand.hbm [shape: f32[256,128], index: 7, kind: output, shape index: {}]  }
   0x1   :  { %13 = vsyncpa [#allocation4], 0 }
   0x2   :  { %15 = vsyncpa [#allocation4 + $0x1], 0  ;;  %s1684_s24 = smov 0   ;;  %s1686_s25 = smov 0  }
   0x3   :  { %s1688_s26 = smov 0   ;;  %s1690_s27 = smov 0  }
   0x4 LB: > { %s1705_s28 = sadd.s32 4294967295, %s1635_s27   ;;  %s1268_s29 = sadd.s32 4294967294, %s1635_s27   ;;  %s1635_s27 = sphi %s1690_s27, %s2055_s27   ;;  %s1631_s26 = sphi %s1688_s26, %s2054_s26   ;;  %s1627_s25 = sphi %s1686_s25, %s2053_s25   ;;  %s1623_s24 = sphi %s1684_s24, %s2052_s24  }
   0x5   : > { %s1709_s30 = sadd.s32 1, %s1635_s27   ;;  %s180_s8 = sadd.s32 1, %s1631_s26 }
   0x6   : > { %s177_s9 = ssub.s32 %s1635_s27, %s1709_s30  ;;  %p190_p0 = scmp.ne.s32.totalorder %s1631_s26, %s1627_s25 }
   0x7   : > { %p178_p1 = scmp.eq.s32.totalorder %s177_s9, 0  ;;  %p191_p2 = scmp.eq.s32.totalorder %s1705_s28, 1 }
   0x8   : > { %p196_p3 = scmp.ne.s32.totalorder %s1627_s25, %s1623_s24  ;;  %p197_p4 = scmp.eq.s32.totalorder %s1268_s29, 1 }
   0x9   : > { %s1720_s10 = scalar_select %p178_p1, %s1631_s26, %s180_s8  }
   0xa   : > { %p1722_p5 = por %p191_p2, %p190_p0  ;;  %p1726_p6 = por %p197_p4, %p196_p3 }
   0xb   : > { %p1269_p7 = scmp.ge.s32.totalorder %s1635_s27, 1  ;;  %p204_p8 = scmp.lt.s32.totalorder %s1635_s27, 3 }
   0xc   : > { %s2043_s11 = scalar_select %p1722_p5, 1, 0 }
   0xd   : > { %s2044_s12 = scalar_select %p1726_p6, 1, 0 }
   0xe   : > { %p2040_p9 = scmp.eq.s32.totalorder %s1705_s28, 0  ;;  %p1733_p10 = pnand %p1269_p7, %p204_p8 }
   0xf   : > { %s1637_s14 = smov [#allocation2]   ;;  %s1541_s19 = scalar_lea.hbm %s2035_s3, 4096 }
  0x10   : > { %s2045_s13 = scalar_select %p1733_p10, 1, 0 }
  0x11   : > { %s222_s15 = sshll.u32 %s1637_s14, 4  ;;  %p1420_p11 = pneg %p1733_p10  ;;  %s223_s15 = int_to_ptr.vmem [resolvable:$true] %s222_s15 }
  0x12   : > { %p1542_p13 = scmp.ne.s32.totalorder %s2035_s3, %s1541_s19  ;;  %p1548_p3 = scmp.lt.u32.totalorder %s1541_s19, %s2035_s3 }
  0x13   : > { %p1741_p12 = pnand %p2040_p9, %p1420_p11 }
  0x15   : > { %p1543_p0 = pneg %p1741_p12 }
  0x17   : > { %p1544_p1 = pnand %p1543_p0, %p1542_p13 }
  0x19   : > { %p1545_p2 = pneg %p1544_p1 }
  0x1b   : > { %p1550_p4 = pnand %p1548_p3, %p1545_p2 }
  0x1d   : > { %1553 = shalt.err (!%p1550_p4)
}
  0x1e   : > { %s1554_s29 = scalar_lea.vmem %s223_s15, 4096  ;;  %p1562_p9 = scmp.lt.s32.totalorder %s223_s15, %s223_s15 }
  0x1f   : > { %p1555_p7 = scmp.ne.s32.totalorder %s223_s15, %s1554_s29  ;;  %p1563_p6 = scmp.lt.s32.totalorder %s1554_s29, %s1554_s29 }
  0x21   : > { %p1557_p8 = pnand %p1555_p7, %p1543_p0  ;;  %p1564_p5 = por %p1563_p6, %p1562_p9 }
  0x23   : > { %p1558_p11 = pneg %p1557_p8 }
  0x25   : > { %p1565_p10 = pnand %p1564_p5, %p1558_p11 }
  0x27   : > { %1568 = shalt.err (!%p1565_p10)
}
  0x28   : > { %s1638_s8 = smov 128   ;;  %s1639_s9 = smov 8  }
  0x29   : > { %1423 = dma.hbm_to_vmem [thread:$0]  (!%p1741_p12), %s2035_s3, 4096, %s223_s15, [#allocation3], %s1638_s8, %s1638_s8, %s1639_s9  }
  0x2a   : > { %p2047_p13 = scmp.ne.s32.totalorder %s2045_s13, 0 }
  0x2b   : > { %p2048_p1 = scmp.eq.s32.totalorder (!%p2047_p13), %s1705_s28, 0 }
  0x2c   : > { %256 = sbr.rel (%p2047_p13) target bundleno = 795 (0x31b), region = 48 }
  0x33   : > { %1614 = dma.done.wait (%p2048_p1), [#allocation3], 4096   ;;  %p2049_p0 = pmov %p2048_p1 }
  0x34   : > { %s1275_s18 = sshll.u32 %s1705_s28, 4  ;;  %v1640_v0 = vmov 0   ;;  %vm399_vm0 = vcmask 1041408   ;;  %vm374_vm1 = vcmask 31744   ;;  %v1477_v5 = vld [vmem:[#allocation2 + $0x4] ss:$8 sps:$4 sm:$0xff]   ;;  %v315_v58 = vlaneseq }
  0x35   : > { %1616 = vsyncadd (%p2049_p0), [#allocation3], 4294963200  ;;  %438 = vmatprep.mubr.bf16.mxu0 %v1640_v0  ;;  %p289_p5 = scmp.lt.s32.totalorder %s1275_s18, 31  ;;  %v1479_v6 = vld [vmem:[#allocation2] ss:$8 sps:$4 sm:$0xff]   ;;  %771 = vmatprep.subr.bf16.mxu1 %v1477_v5  ;;  %v1529_v48 = vld [vmem:[%s2037_s5 + $0x50] sm:$0xff]  }
  0x36   : > { %v1285_v1 = vld.sshfl [vmem:[%s2033_s1] sm:$0x33 pattern:$0x76325410]  ;;  %v1480_v7 = vld [vmem:[#allocation2 + $0x14] ss:$8 sps:$4 sm:$0xff]   ;;  %772 = vmatpush1.bf16.msra.mxu1 %v1479_v6 }
  0x37   : > { %s2057_s18 = smov (!%p289_p5, %s1275_s18), 31  ;;  %v373_v2 = vcombine.high %v1285_v1, %v1285_v1  ;;  %v401_v3 = vsel %vm399_vm0, %v1285_v1, 0  ;;  %v1482_v9 = vld [vmem:[#allocation2 + $0x10] ss:$8 sps:$4 sm:$0xff]   ;;  %773 = vmatprep.subr.bf16.mxu1 %v1480_v7  ;;  %v1483_v10 = vld [vmem:[#allocation2 + $0x24] ss:$8 sps:$4 sm:$0xff]  }
  0x38   : > { %s1276_s16 = sshll.u32 %s2057_s18, 2  ;;  %v1485_v11 = vld [vmem:[#allocation2 + $0x20] ss:$8 sps:$4 sm:$0xff]   ;;  %v1486_v12 = vld [vmem:[#allocation2 + $0x34] ss:$8 sps:$4 sm:$0xff]   ;;  %v1842_v59 = vshrl.u32 %v315_v58, 7 }
  0x39   : > { %s1772_s13 = scalar_lea.vmem %s2032_s0, %s1276_s16  ;;  %1286 = vmatprep.subr.msk.bf16.mxu0 %vm399_vm0, %v373_v2  ;;  %v1488_v14 = vld [vmem:[#allocation2 + $0x30] ss:$8 sps:$4 sm:$0xff]   ;;  %v1489_v15 = vld [vmem:[#allocation2 + $0x44] ss:$8 sps:$4 sm:$0xff]   ;;  %v1491_v16 = vld [vmem:[#allocation2 + $0x40] ss:$8 sps:$4 sm:$0xff]  }
  0x3a   : > { %v1469_v4 = vld [vmem:[%s1772_s13] sm:$0xff]   ;;  %407 = vmatpush1.bf16.msra.mxu0 %v401_v3  ;;  %v1470_v8 = vld [vmem:[%s1772_s13 + $0x8] sm:$0xff]   ;;  %774 = vmatpush1.bf16.msra.mxu1 %v1482_v9  ;;  %v1471_v13 = vld [vmem:[%s1772_s13 + $0x10] sm:$0xff]   ;;  %v317_v60 = vsub.s32 0, %v1842_v59  ;;  %v321_v62 = vsub.s32 1, %v1842_v59  ;;  %s285_s16 = sand.u32 1, %s1627_s25  }
  0x3b   : > { %775 = vmatprep.subr.bf16.mxu1 %v1483_v10  ;;  %v1472_v17 = vld [vmem:[%s1772_s13 + $0x18] sm:$0xff]   ;;  %v1495_v20 = vld [vmem:[#allocation2 + $0x64] ss:$8 sps:$4 sm:$0xff]   ;;  %v1497_v21 = vld [vmem:[#allocation2 + $0x60] ss:$8 sps:$4 sm:$0xff]   ;;  %s1274_s19 = sshll.u32 %s285_s16, 7 }
  0x3c   : > { %v1492_v18 = vld [vmem:[#allocation2 + $0x54] ss:$8 sps:$4 sm:$0xff]   ;;  %v1494_v19 = vld [vmem:[#allocation2 + $0x50] ss:$8 sps:$4 sm:$0xff]   ;;  %v1473_v23 = vld [vmem:[%s1772_s13 + $0x20] sm:$0xff]   ;;  %s1947_s20 = scalar_lea.vmem [#allocation5], %s1274_s19 }
  0x3d   : > { %1287 = vmatmul.mubr.msk.bf16.vlgmr.msra.gmra.mrb[0].mxu0 %vm374_vm1, %v1469_v4  ;;  %v1498_v22 = vld [vmem:[#allocation2 + $0x74] ss:$8 sps:$4 sm:$0xff]   ;;  %v1500_v24 = vld [vmem:[#allocation2 + $0x70] ss:$8 sps:$4 sm:$0xff]   ;;  %v1501_v25 = vld [vmem:[#allocation2 + $0x84] ss:$8 sps:$4 sm:$0xff]  }
  0x3e   : > { %448 = vmatprep.mubr.bf16.mxu0 %v1640_v0  ;;  %776 = vmatpush1.bf16.msra.mxu1 %v1485_v11  ;;  %v1503_v26 = vld [vmem:[#allocation2 + $0x80] ss:$8 sps:$4 sm:$0xff]   ;;  %v1504_v27 = vld [vmem:[#allocation2 + $0x94] ss:$8 sps:$4 sm:$0xff]   ;;  %v1506_v29 = vld [vmem:[#allocation2 + $0x90] ss:$8 sps:$4 sm:$0xff]  }
  0x3f   : > { %777 = vmatprep.subr.bf16.mxu1 %v1486_v12  ;;  %v1474_v28 = vld [vmem:[%s1772_s13 + $0x28] sm:$0xff]   ;;  %v1510_v32 = vld [vmem:[#allocation2 + $0xb4] ss:$8 sps:$4 sm:$0xff]   ;;  %v1512_v34 = vld [vmem:[#allocation2 + $0xb0] ss:$8 sps:$4 sm:$0xff]   ;;  %s1349_s21 = sshll.u32 %s1705_s28, 11 }
  0x40   : > { %v1507_v30 = vld [vmem:[#allocation2 + $0xa4] ss:$8 sps:$4 sm:$0xff]   ;;  %v1509_v31 = vld [vmem:[#allocation2 + $0xa0] ss:$8 sps:$4 sm:$0xff]   ;;  %v1475_v33 = vld [vmem:[%s1772_s13 + $0x30] sm:$0xff]   ;;  %s1194_s22 = sshll.u32 %s1947_s20, 4  ;;  %s1982_s8 = scalar_lea.hbm %s2039_s7, %s1349_s21  ;;  %s1984_s22 = int_to_ptr.vmem [resolvable:$true] %s1194_s22 }
  0x41   : > { %v1513_v35 = vld [vmem:[#allocation2 + $0xc4] ss:$8 sps:$4 sm:$0xff]   ;;  %v1515_v36 = vld [vmem:[#allocation2 + $0xc0] ss:$8 sps:$4 sm:$0xff]   ;;  %v1516_v37 = vld [vmem:[#allocation2 + $0xd4] ss:$8 sps:$4 sm:$0xff]  }
  0x42   : > { %778 = vmatpush1.bf16.msra.mxu1 %v1488_v14  ;;  %v1476_v38 = vld [vmem:[%s1772_s13 + $0x38] sm:$0xff]   ;;  %v1519_v40 = vld [vmem:[#allocation2 + $0xe4] ss:$8 sps:$4 sm:$0xff]   ;;  %v1521_v41 = vld [vmem:[#allocation2 + $0xe0] ss:$8 sps:$4 sm:$0xff]   ;;  %s1991_s28 = scalar_lea.sflag [#allocation4], %s285_s16 }
  0x43   : > { %779 = vmatprep.subr.bf16.mxu1 %v1489_v15  ;;  %v1518_v39 = vld [vmem:[#allocation2 + $0xd0] ss:$8 sps:$4 sm:$0xff]   ;;  %v1522_v42 = vld [vmem:[#allocation2 + $0xf4] ss:$8 sps:$4 sm:$0xff]   ;;  %v1525_v44 = vld [vmem:[%s2037_s5 + $0x40] sm:$0xff]   ;;  %s1569_s9 = scalar_lea.vmem %s1984_s22, 2048 }
  0x44   : > { %v1524_v43 = vld [vmem:[#allocation2 + $0xf0] ss:$8 sps:$4 sm:$0xff]   ;;  %v1526_v45 = vld [vmem:[%s2037_s5] sm:$0xff]   ;;  %v1527_v46 = vld [vmem:[%s2037_s5 + $0x48] sm:$0xff]   ;;  %1350 = vmatprep.subr.bf16.mxu0 %v1525_v44  ;;  %p1570_p6 = scmp.ne.s32.totalorder %s1984_s22, %s1569_s9  ;;  %p2050_p9 = scmp.ne.s32.totalorder %s2043_s11, 0 }
  0x45   : > { %1288 = vmatmul.mubr.msk.bf16.gmra.mrb[4].mxu0 %vm374_vm1, %v1470_v8  ;;  %v1528_v47 = vld [vmem:[%s2037_s5 + $0x8] sm:$0xff]   ;;  %v1530_v49 = vld [vmem:[%s2037_s5 + $0x10] sm:$0xff]   ;;  %v1531_v50 = vld [vmem:[%s2037_s5 + $0x58] sm:$0xff]   ;;  %s1641_s14 = smov [#allocation5]  }
  0x46   : > { %458 = vmatprep.mubr.bf16.mxu0 %v1640_v0  ;;  %780 = vmatpush1.bf16.msra.mxu1 %v1491_v16  ;;  %v1532_v51 = vld [vmem:[%s2037_s5 + $0x18] sm:$0xff]   ;;  %v1533_v52 = vld [vmem:[%s2037_s5 + $0x60] sm:$0xff]   ;;  %v1535_v54 = vld [vmem:[%s2037_s5 + $0x68] sm:$0xff]   ;;  %p1571_p10 = pnand %p1570_p6, %p2050_p9  ;;  %s1573_s17 = sshll.u32 %s1641_s14, 4  ;;  %s1574_s17 = int_to_ptr.vmem [resolvable:$false] %s1573_s17 }
  0x47   : > { %781 = vmatprep.subr.bf16.mxu1 %v1492_v18  ;;  %1351 = vmatpush3.bf16.msra.mxu0 %v1526_v45  ;;  %v1534_v53 = vld [vmem:[%s2037_s5 + $0x20] sm:$0xff]   ;;  %v1536_v55 = vld [vmem:[%s2037_s5 + $0x28] sm:$0xff]   ;;  %v1537_v56 = vld [vmem:[%s2037_s5 + $0x70] sm:$0xff]   ;;  %s1575_s18 = scalar_lea.vmem %s1574_s17, 4096  ;;  %p1576_p2 = scmp.lt.s32.totalorder %s1984_s22, %s1574_s17 }
  0x48   : > { %1352 = vmatprep.subr.bf16.mxu0 %v1527_v46  ;;  %v1538_v57 = vld [vmem:[%s2037_s5 + $0x30] sm:$0xff]   ;;  %v313_v61 = vld [vmem:[%s2034_s2] sm:$0x3]  ;;  %p1572_p12 = pneg %p1571_p10  ;;  %p1577_p3 = scmp.lt.s32.totalorder %s1575_s18, %s1569_s9 }
  0x49   : > { %v1851_v63 = vrot.slane %v313_v61, %v317_v60 }
  0x4a   : > { %782 = vmatpush1.bf16.msra.mxu1 %v1494_v19  ;;  %p1578_p4 = por %p1577_p3, %p1576_p2 }
  0x4b   : > { %783 = vmatprep.subr.bf16.mxu1 %v1495_v20  ;;  %1353 = vmatpush3.bf16.msra.mxu0 %v1528_v47 }
  0x4c   : > { %1354 = vmatprep.subr.bf16.mxu0 %v1529_v48  ;;  %p1579_p7 = pnand %p1578_p4, %p1572_p12 }
  0x4d   : > { %1289 = vmatmul.mubr.msk.bf16.gmra.mrb[8].mxu0 %vm374_vm1, %v1471_v13 }
  0x4e   : > { %468 = vmatprep.mubr.bf16.mxu0 %v1640_v0  ;;  %784 = vmatpush1.bf16.msra.mxu1 %v1497_v21 }
  0x4f   : > { %785 = vmatprep.subr.bf16.mxu1 %v1498_v22  ;;  %1355 = vmatpush3.bf16.msra.mxu0 %v1530_v49 }
  0x50   : > { %1356 = vmatprep.subr.bf16.mxu0 %v1531_v50 }
  0x52   : > { %786 = vmatpush1.bf16.msra.mxu1 %v1500_v24 }
  0x53   : > { %787 = vmatprep.subr.bf16.mxu1 %v1501_v25  ;;  %1357 = vmatpush3.bf16.msra.mxu0 %v1532_v51 }
  0x54   : > { %1358 = vmatprep.subr.bf16.mxu0 %v1533_v52 }
  0x55   : > { %1290 = vmatmul.mubr.msk.bf16.gmra.mrb[12].mxu0 %vm374_vm1, %v1472_v17 }
  0x56   : > { %478 = vmatprep.mubr.bf16.mxu0 %v1640_v0  ;;  %788 = vmatpush1.bf16.msra.mxu1 %v1503_v26 }
  0x57   : > { %789 = vmatprep.subr.bf16.mxu1 %v1504_v27  ;;  %1359 = vmatpush3.bf16.msra.mxu0 %v1534_v53 }
  0x58   : > { %1360 = vmatprep.subr.bf16.mxu0 %v1535_v54 }
  0x5a   : > { %790 = vmatpush1.bf16.msra.mxu1 %v1506_v29 }
  0x5b   : > { %791 = vmatprep.subr.bf16.mxu1 %v1507_v30  ;;  %1361 = vmatpush3.bf16.msra.mxu0 %v1536_v55 }
  0x5c   : > { %1362 = vmatprep.subr.bf16.mxu0 %v1537_v56 }
  0x5d   : > { %1291 = vmatmul.mubr.msk.bf16.gmra.mrb[16].mxu0 %vm374_vm1, %v1473_v23 }
  0x5e   : > { %488 = vmatprep.mubr.bf16.mxu0 %v1640_v0  ;;  %792 = vmatpush1.bf16.msra.mxu1 %v1509_v31 }
  0x5f   : > { %793 = vmatprep.subr.bf16.mxu1 %v1510_v32  ;;  %1363 = vmatpush3.bf16.msra.mxu0 %v1538_v57 }
  0x62   : > { %794 = vmatpush1.bf16.msra.mxu1 %v1512_v34 }
  0x63   : > { %795 = vmatprep.subr.bf16.mxu1 %v1513_v35 }
  0x65   : > { %1292 = vmatmul.mubr.msk.bf16.gmra.mrb[20].mxu0 %vm374_vm1, %v1474_v28 }
  0x66   : > { %498 = vmatprep.mubr.bf16.mxu0 %v1640_v0  ;;  %796 = vmatpush1.bf16.msra.mxu1 %v1515_v36 }
  0x67   : > { %797 = vmatprep.subr.bf16.mxu1 %v1516_v37 }
  0x6a   : > { %798 = vmatpush1.bf16.msra.mxu1 %v1518_v39 }
  0x6b   : > { %799 = vmatprep.subr.bf16.mxu1 %v1519_v40 }
  0x6d   : > { %1293 = vmatmul.mubr.msk.bf16.gmra.mrb[24].mxu0 %vm374_vm1, %v1475_v33 }
  0x6e   : > { %508 = vmatprep.mubr.bf16.mxu0 %v1640_v0  ;;  %800 = vmatpush1.bf16.msra.mxu1 %v1521_v41  ;;  %v1855_v0 = vrot.slane %v313_v61, %v321_v62 }
  0x6f   : > { %801 = vmatprep.subr.bf16.mxu1 %v1522_v42 }
  0x72   : > { %802 = vmatpush1.bf16.msra.mxu1 %v1524_v43 }
  0x75   : > { %1294 = vmatmul.mubr.msk.bf16.gmra.mrb[28].mxu0 %vm374_vm1, %v1476_v38 }
 0x110   : > { %v440_v1 = vpop.f32.mrb[0].mxu0 }
 0x111   : > { %v441_v2 = vadd.f32 %v440_v1, %v1851_v63  ;;  %v442_v3 = vpop.f32.mrb[1].mxu0 }
 0x112   : > { %v443_v4 = vadd.f32 %v442_v3, %v1855_v0  ;;  %v444_v5 = vpop.f32.mrb[2].mxu0 }
 0x113   : > { %v445_v6 = vadd.f32 %v444_v5, %v1851_v63  ;;  %v446_v7 = vpop.f32.mrb[3].mxu0  ;;  %v519_v9 = vmax.f32 %v441_v2, 0.0 }
 0x114   : > { %v447_v8 = vadd.f32 %v446_v7, %v1855_v0  ;;  %v520_v11 = vmax.f32 %v443_v4, 0.0 }
 0x115   : > { %v521_v10 = vmax.f32 %v445_v6, 0.0 }
 0x116   : > { %v522_v12 = vmax.f32 %v447_v8, 0.0 }
 0x117   : > { %v551_v13 = vpack.c.bf16 %v521_v10, %v519_v9 }
 0x118   : > { %v450_v14 = vpop.f32.mrb[4].mxu0  ;;  %v552_v15 = vpack.c.bf16 %v522_v12, %v520_v11 }
 0x119   : > { %v451_v16 = vadd.f32 %v450_v14, %v1851_v63  ;;  %v452_v17 = vpop.f32.mrb[5].mxu0 }
 0x11a   : > { %v453_v18 = vadd.f32 %v452_v17, %v1855_v0  ;;  %v454_v19 = vpop.f32.mrb[6].mxu0  ;;  %803 = vmatprep.mubr.bf16.mxu1 %v552_v15 }
 0x11b   : > { %v455_v20 = vadd.f32 %v454_v19, %v1851_v63  ;;  %v456_v21 = vpop.f32.mrb[7].mxu0  ;;  %804 = vmatmul.mubr.bf16.vlgmr.msra.gmra.mrb[0].mxu1 %v551_v13  ;;  %v523_v23 = vmax.f32 %v451_v16, 0.0 }
 0x11c   : > { %v457_v22 = vadd.f32 %v456_v21, %v1855_v0  ;;  %v524_v25 = vmax.f32 %v453_v18, 0.0 }
 0x11d   : > { %v525_v24 = vmax.f32 %v455_v20, 0.0 }
 0x11e   : > { %v526_v26 = vmax.f32 %v457_v22, 0.0 }
 0x11f   : > { %v553_v27 = vpack.c.bf16 %v525_v24, %v523_v23 }
 0x120   : > { %v554_v28 = vpack.c.bf16 %v526_v26, %v524_v25  ;;  %v460_v29 = vpop.f32.mrb[8].mxu0 }
 0x121   : > { %v461_v30 = vadd.f32 %v460_v29, %v1851_v63  ;;  %v462_v31 = vpop.f32.mrb[9].mxu0 }
 0x122   : > { %v463_v32 = vadd.f32 %v462_v31, %v1855_v0  ;;  %v464_v33 = vpop.f32.mrb[10].mxu0  ;;  %813 = vmatprep.mubr.bf16.mxu1 %v554_v28 }
 0x123   : > { %v465_v34 = vadd.f32 %v464_v33, %v1851_v63  ;;  %v466_v35 = vpop.f32.mrb[11].mxu0  ;;  %814 = vmatmul.mubr.bf16.gmra.mrb[4].mxu1 %v553_v27  ;;  %v527_v37 = vmax.f32 %v461_v30, 0.0 }
 0x124   : > { %v467_v36 = vadd.f32 %v466_v35, %v1855_v0  ;;  %v528_v39 = vmax.f32 %v463_v32, 0.0 }
 0x125   : > { %v529_v38 = vmax.f32 %v465_v34, 0.0 }
 0x126   : > { %v530_v40 = vmax.f32 %v467_v36, 0.0 }
 0x127   : > { %v555_v41 = vpack.c.bf16 %v529_v38, %v527_v37 }
 0x128   : > { %v556_v42 = vpack.c.bf16 %v530_v40, %v528_v39  ;;  %v470_v43 = vpop.f32.mrb[12].mxu0 }
 0x129   : > { %v471_v44 = vadd.f32 %v470_v43, %v1851_v63  ;;  %v472_v45 = vpop.f32.mrb[13].mxu0 }
 0x12a   : > { %v473_v46 = vadd.f32 %v472_v45, %v1855_v0  ;;  %v474_v47 = vpop.f32.mrb[14].mxu0  ;;  %823 = vmatprep.mubr.bf16.mxu1 %v556_v42 }
 0x12b   : > { %v475_v48 = vadd.f32 %v474_v47, %v1851_v63  ;;  %v476_v49 = vpop.f32.mrb[15].mxu0  ;;  %824 = vmatmul.mubr.bf16.gmra.mrb[8].mxu1 %v555_v41  ;;  %v531_v51 = vmax.f32 %v471_v44, 0.0 }
 0x12c   : > { %v477_v50 = vadd.f32 %v476_v49, %v1855_v0  ;;  %v532_v53 = vmax.f32 %v473_v46, 0.0 }
 0x12d   : > { %v533_v52 = vmax.f32 %v475_v48, 0.0 }
 0x12e   : > { %v534_v54 = vmax.f32 %v477_v50, 0.0 }
 0x12f   : > { %v557_v55 = vpack.c.bf16 %v533_v52, %v531_v51 }
 0x130   : > { %v558_v56 = vpack.c.bf16 %v534_v54, %v532_v53  ;;  %v480_v57 = vpop.f32.mrb[16].mxu0  ;;  %v1539_v54 = vld [vmem:[%s2037_s5 + $0x78] sm:$0xff]  }
 0x131   : > { %v481_v58 = vadd.f32 %v480_v57, %v1851_v63  ;;  %v482_v61 = vpop.f32.mrb[17].mxu0  ;;  %1364 = vmatprep.subr.bf16.mxu0 %v1539_v54 }
 0x132   : > { %v483_v1 = vadd.f32 %v482_v61, %v1855_v0  ;;  %v484_v2 = vpop.f32.mrb[18].mxu0  ;;  %833 = vmatprep.mubr.bf16.mxu1 %v558_v56 }
 0x133   : > { %v485_v3 = vadd.f32 %v484_v2, %v1851_v63  ;;  %v486_v4 = vpop.f32.mrb[19].mxu0  ;;  %834 = vmatmul.mubr.bf16.gmra.mrb[12].mxu1 %v557_v55  ;;  %v535_v6 = vmax.f32 %v481_v58, 0.0 }
 0x134   : > { %v487_v5 = vadd.f32 %v486_v4, %v1855_v0  ;;  %v536_v8 = vmax.f32 %v483_v1, 0.0 }
 0x135   : > { %v537_v7 = vmax.f32 %v485_v3, 0.0 }
 0x136   : > { %v538_v9 = vmax.f32 %v487_v5, 0.0 }
 0x137   : > { %v559_v10 = vpack.c.bf16 %v537_v7, %v535_v6 }
 0x138   : > { %v560_v11 = vpack.c.bf16 %v538_v9, %v536_v8  ;;  %v490_v12 = vpop.f32.mrb[20].mxu0 }
 0x139   : > { %v491_v13 = vadd.f32 %v490_v12, %v1851_v63  ;;  %v492_v14 = vpop.f32.mrb[21].mxu0 }
 0x13a   : > { %v493_v15 = vadd.f32 %v492_v14, %v1855_v0  ;;  %v494_v16 = vpop.f32.mrb[22].mxu0  ;;  %843 = vmatprep.mubr.bf16.mxu1 %v560_v11 }
 0x13b   : > { %v495_v17 = vadd.f32 %v494_v16, %v1851_v63  ;;  %v496_v18 = vpop.f32.mrb[23].mxu0  ;;  %844 = vmatmul.mubr.bf16.gmra.mrb[16].mxu1 %v559_v10  ;;  %v539_v20 = vmax.f32 %v491_v13, 0.0 }
 0x13c   : > { %v497_v19 = vadd.f32 %v496_v18, %v1855_v0  ;;  %v540_v22 = vmax.f32 %v493_v15, 0.0 }
 0x13d   : > { %v541_v21 = vmax.f32 %v495_v17, 0.0 }
 0x13e   : > { %v542_v23 = vmax.f32 %v497_v19, 0.0 }
 0x13f   : > { %v561_v24 = vpack.c.bf16 %v541_v21, %v539_v20 }
 0x140   : > { %v562_v25 = vpack.c.bf16 %v542_v23, %v540_v22  ;;  %v500_v26 = vpop.f32.mrb[24].mxu0 }
 0x141   : > { %v501_v27 = vadd.f32 %v500_v26, %v1851_v63  ;;  %v502_v28 = vpop.f32.mrb[25].mxu0 }
 0x142   : > { %v503_v29 = vadd.f32 %v502_v28, %v1855_v0  ;;  %v504_v30 = vpop.f32.mrb[26].mxu0  ;;  %853 = vmatprep.mubr.bf16.mxu1 %v562_v25 }
 0x143   : > { %v505_v31 = vadd.f32 %v504_v30, %v1851_v63  ;;  %v506_v32 = vpop.f32.mrb[27].mxu0  ;;  %854 = vmatmul.mubr.bf16.gmra.mrb[20].mxu1 %v561_v24  ;;  %v543_v34 = vmax.f32 %v501_v27, 0.0 }
 0x144   : > { %v507_v33 = vadd.f32 %v506_v32, %v1855_v0  ;;  %v544_v36 = vmax.f32 %v503_v29, 0.0 }
 0x145   : > { %v545_v35 = vmax.f32 %v505_v31, 0.0 }
 0x146   : > { %v546_v37 = vmax.f32 %v507_v33, 0.0 }
 0x147   : > { %v563_v38 = vpack.c.bf16 %v545_v35, %v543_v34 }
 0x148   : > { %v564_v39 = vpack.c.bf16 %v546_v37, %v544_v36  ;;  %v510_v40 = vpop.f32.mrb[28].mxu0 }
 0x149   : > { %v511_v41 = vadd.f32 %v510_v40, %v1851_v63  ;;  %v512_v42 = vpop.f32.mrb[29].mxu0 }
 0x14a   : > { %v513_v43 = vadd.f32 %v512_v42, %v1855_v0  ;;  %v514_v44 = vpop.f32.mrb[30].mxu0  ;;  %863 = vmatprep.mubr.bf16.mxu1 %v564_v39 }
 0x14b   : > { %v515_v45 = vadd.f32 %v514_v44, %v1851_v63  ;;  %v516_v46 = vpop.f32.mrb[31].mxu0  ;;  %864 = vmatmul.mubr.bf16.gmra.mrb[24].mxu1 %v563_v38  ;;  %v547_v48 = vmax.f32 %v511_v41, 0.0  ;;  %v1540_v63 = vld [vmem:[%s2037_s5 + $0x38] sm:$0xff]  }
 0x14c   : > { %v517_v47 = vadd.f32 %v516_v46, %v1855_v0  ;;  %v548_v50 = vmax.f32 %v513_v43, 0.0  ;;  %1365 = vmatpush3.bf16.msra.mxu0 %v1540_v63  ;;  %v599_v0 = vld [vmem:[%s2036_s4] sm:$0x3] }
 0x14d   : > { %v549_v49 = vmax.f32 %v515_v45, 0.0  ;;  %v1900_v55 = vrot.slane %v599_v0, %v317_v60  ;;  %v1904_v56 = vrot.slane %v599_v0, %v321_v62 }
 0x14e   : > { %v550_v51 = vmax.f32 %v517_v47, 0.0 }
 0x14f   : > { %v565_v52 = vpack.c.bf16 %v549_v49, %v547_v48 }
 0x150   : > { %v566_v53 = vpack.c.bf16 %v550_v51, %v548_v50 }
 0x152   : > { %873 = vmatprep.mubr.bf16.mxu1 %v566_v53 }
 0x153   : > { %874 = vmatmul.mubr.bf16.gmra.mrb[28].mxu1 %v565_v52 }
 0x1ee   : > { %v805_v57 = vpop.f32.mrb[0].mxu1 }
 0x1ef   : > { %v806_v58 = vadd.f32 %v805_v57, %v1900_v55  ;;  %v807_v61 = vpop.f32.mrb[1].mxu1 }
 0x1f0   : > { %v808_v1 = vadd.f32 %v807_v61, %v1904_v56  ;;  %v809_v2 = vpop.f32.mrb[2].mxu1 }
 0x1f1   : > { %v810_v3 = vadd.f32 %v809_v2, %v1900_v55  ;;  %v811_v4 = vpop.f32.mrb[3].mxu1  ;;  %v884_v6 = vmax.f32 %v806_v58, 0.0 }
 0x1f2   : > { %v812_v5 = vadd.f32 %v811_v4, %v1904_v56  ;;  %v885_v60 = vmax.f32 %v808_v1, 0.0 }
 0x1f3   : > { %v886_v7 = vmax.f32 %v810_v3, 0.0 }
 0x1f4   : > { %v887_v8 = vmax.f32 %v812_v5, 0.0 }
 0x1f5   : > { %v916_v9 = vpack.c.bf16 %v886_v7, %v884_v6 }
 0x1f6   : > { %v917_v59 = vpack.c.bf16 %v887_v8, %v885_v60  ;;  %v815_v62 = vpop.f32.mrb[4].mxu1 }
 0x1f7   : > { %v816_v10 = vadd.f32 %v815_v62, %v1900_v55  ;;  %v817_v11 = vpop.f32.mrb[5].mxu1 }
 0x1f8   : > { %v818_v12 = vadd.f32 %v817_v11, %v1904_v56  ;;  %v819_v13 = vpop.f32.mrb[6].mxu1  ;;  %1099 = vmatprep.mubr.bf16.mxu0 %v917_v59 }
 0x1f9   : > { %v820_v14 = vadd.f32 %v819_v13, %v1900_v55  ;;  %v821_v15 = vpop.f32.mrb[7].mxu1  ;;  %1100 = vmatmul.mubr.bf16.vlgmr.msra.gmra.mrb[32].mxu0 %v916_v9  ;;  %v888_v17 = vmax.f32 %v816_v10, 0.0 }
 0x1fa   : > { %v822_v16 = vadd.f32 %v821_v15, %v1904_v56  ;;  %v889_v19 = vmax.f32 %v818_v12, 0.0 }
 0x1fb   : > { %v890_v18 = vmax.f32 %v820_v14, 0.0 }
 0x1fc   : > { %v891_v20 = vmax.f32 %v822_v16, 0.0 }
 0x1fd   : > { %v918_v21 = vpack.c.bf16 %v890_v18, %v888_v17 }
 0x1fe   : > { %v919_v22 = vpack.c.bf16 %v891_v20, %v889_v19  ;;  %v825_v23 = vpop.f32.mrb[8].mxu1 }
 0x1ff   : > { %v826_v24 = vadd.f32 %v825_v23, %v1900_v55  ;;  %v827_v25 = vpop.f32.mrb[9].mxu1 }
 0x200   : > { %v828_v26 = vadd.f32 %v827_v25, %v1904_v56  ;;  %v829_v27 = vpop.f32.mrb[10].mxu1  ;;  %1107 = vmatprep.mubr.bf16.mxu0 %v919_v22 }
 0x201   : > { %v830_v28 = vadd.f32 %v829_v27, %v1900_v55  ;;  %v831_v29 = vpop.f32.mrb[11].mxu1  ;;  %1108 = vmatmul.mubr.bf16.gmra.mrb[36].mxu0 %v918_v21  ;;  %v892_v31 = vmax.f32 %v826_v24, 0.0 }
 0x202   : > { %v832_v30 = vadd.f32 %v831_v29, %v1904_v56  ;;  %v893_v33 = vmax.f32 %v828_v26, 0.0 }
 0x203   : > { %v894_v32 = vmax.f32 %v830_v28, 0.0 }
 0x204   : > { %v895_v34 = vmax.f32 %v832_v30, 0.0 }
 0x205   : > { %v920_v35 = vpack.c.bf16 %v894_v32, %v892_v31 }
 0x206   : > { %v921_v36 = vpack.c.bf16 %v895_v34, %v893_v33  ;;  %v835_v37 = vpop.f32.mrb[12].mxu1 }
 0x207   : > { %v836_v38 = vadd.f32 %v835_v37, %v1900_v55  ;;  %v837_v39 = vpop.f32.mrb[13].mxu1 }
 0x208   : > { %v838_v40 = vadd.f32 %v837_v39, %v1904_v56  ;;  %v839_v41 = vpop.f32.mrb[14].mxu1  ;;  %1115 = vmatprep.mubr.bf16.mxu0 %v921_v36 }
 0x209   : > { %v840_v42 = vadd.f32 %v839_v41, %v1900_v55  ;;  %v841_v43 = vpop.f32.mrb[15].mxu1  ;;  %1116 = vmatmul.mubr.bf16.gmra.mrb[40].mxu0 %v920_v35  ;;  %v896_v45 = vmax.f32 %v836_v38, 0.0 }
 0x20a   : > { %v842_v44 = vadd.f32 %v841_v43, %v1904_v56  ;;  %v897_v47 = vmax.f32 %v838_v40, 0.0 }
 0x20b   : > { %v898_v46 = vmax.f32 %v840_v42, 0.0 }
 0x20c   : > { %v899_v48 = vmax.f32 %v842_v44, 0.0 }
 0x20d   : > { %v922_v49 = vpack.c.bf16 %v898_v46, %v896_v45 }
 0x20e   : > { %v923_v50 = vpack.c.bf16 %v899_v48, %v897_v47  ;;  %v845_v51 = vpop.f32.mrb[16].mxu1 }
 0x20f   : > { %v846_v52 = vadd.f32 %v845_v51, %v1900_v55  ;;  %v847_v53 = vpop.f32.mrb[17].mxu1 }
 0x210   : > { %v848_v54 = vadd.f32 %v847_v53, %v1904_v56  ;;  %v849_v63 = vpop.f32.mrb[18].mxu1  ;;  %1123 = vmatprep.mubr.bf16.mxu0 %v923_v50 }
 0x211   : > { %v850_v0 = vadd.f32 %v849_v63, %v1900_v55  ;;  %v851_v57 = vpop.f32.mrb[19].mxu1  ;;  %1124 = vmatmul.mubr.bf16.gmra.mrb[44].mxu0 %v922_v49  ;;  %v900_v61 = vmax.f32 %v846_v52, 0.0 }
 0x212   : > { %v852_v58 = vadd.f32 %v851_v57, %v1904_v56  ;;  %v901_v2 = vmax.f32 %v848_v54, 0.0 }
 0x213   : > { %v902_v1 = vmax.f32 %v850_v0, 0.0 }
 0x214   : > { %v903_v3 = vmax.f32 %v852_v58, 0.0 }
 0x215   : > { %v924_v4 = vpack.c.bf16 %v902_v1, %v900_v61 }
 0x216   : > { %v925_v5 = vpack.c.bf16 %v903_v3, %v901_v2  ;;  %v855_v6 = vpop.f32.mrb[20].mxu1 }
 0x217   : > { %v856_v7 = vadd.f32 %v855_v6, %v1900_v55  ;;  %v857_v60 = vpop.f32.mrb[21].mxu1 }
 0x218   : > { %v858_v8 = vadd.f32 %v857_v60, %v1904_v56  ;;  %v859_v9 = vpop.f32.mrb[22].mxu1  ;;  %1131 = vmatprep.mubr.bf16.mxu0 %v925_v5 }
 0x219   : > { %v860_v59 = vadd.f32 %v859_v9, %v1900_v55  ;;  %v861_v62 = vpop.f32.mrb[23].mxu1  ;;  %1132 = vmatmul.mubr.bf16.gmra.mrb[48].mxu0 %v924_v4  ;;  %v904_v11 = vmax.f32 %v856_v7, 0.0 }
 0x21a   : > { %v862_v10 = vadd.f32 %v861_v62, %v1904_v56  ;;  %v905_v13 = vmax.f32 %v858_v8, 0.0 }
 0x21b   : > { %v906_v12 = vmax.f32 %v860_v59, 0.0 }
 0x21c   : > { %v907_v14 = vmax.f32 %v862_v10, 0.0 }
 0x21d   : > { %v926_v15 = vpack.c.bf16 %v906_v12, %v904_v11 }
 0x21e   : > { %v927_v16 = vpack.c.bf16 %v907_v14, %v905_v13  ;;  %v865_v17 = vpop.f32.mrb[24].mxu1 }
 0x21f   : > { %v866_v18 = vadd.f32 %v865_v17, %v1900_v55  ;;  %v867_v19 = vpop.f32.mrb[25].mxu1 }
 0x220   : > { %v868_v20 = vadd.f32 %v867_v19, %v1904_v56  ;;  %v869_v21 = vpop.f32.mrb[26].mxu1  ;;  %1139 = vmatprep.mubr.bf16.mxu0 %v927_v16 }
 0x221   : > { %v870_v22 = vadd.f32 %v869_v21, %v1900_v55  ;;  %v871_v23 = vpop.f32.mrb[27].mxu1  ;;  %1140 = vmatmul.mubr.bf16.gmra.mrb[52].mxu0 %v926_v15  ;;  %v908_v25 = vmax.f32 %v866_v18, 0.0 }
 0x222   : > { %v872_v24 = vadd.f32 %v871_v23, %v1904_v56  ;;  %v909_v27 = vmax.f32 %v868_v20, 0.0 }
 0x223   : > { %v910_v26 = vmax.f32 %v870_v22, 0.0 }
 0x224   : > { %v911_v28 = vmax.f32 %v872_v24, 0.0 }
 0x225   : > { %v928_v29 = vpack.c.bf16 %v910_v26, %v908_v25 }
 0x226   : > { %v929_v30 = vpack.c.bf16 %v911_v28, %v909_v27  ;;  %v875_v31 = vpop.f32.mrb[28].mxu1 }
 0x227   : > { %v876_v32 = vadd.f32 %v875_v31, %v1900_v55  ;;  %v877_v33 = vpop.f32.mrb[29].mxu1 }
 0x228   : > { %v878_v34 = vadd.f32 %v877_v33, %v1904_v56  ;;  %v879_v35 = vpop.f32.mrb[30].mxu1  ;;  %1147 = vmatprep.mubr.bf16.mxu0 %v929_v30 }
 0x229   : > { %v880_v36 = vadd.f32 %v879_v35, %v1900_v55  ;;  %v881_v37 = vpop.f32.mrb[31].mxu1  ;;  %1148 = vmatmul.mubr.bf16.gmra.mrb[56].mxu0 %v928_v29  ;;  %v912_v39 = vmax.f32 %v876_v32, 0.0  ;;  %v1944_v55 = vld [vmem:[%s2038_s6] ss:$0 sm:$0xff] }
 0x22a   : > { %v882_v38 = vadd.f32 %v881_v37, %v1904_v56  ;;  %v913_v41 = vmax.f32 %v878_v34, 0.0 }
 0x22b   : > { %v914_v40 = vmax.f32 %v880_v36, 0.0 }
 0x22c   : > { %v915_v42 = vmax.f32 %v882_v38, 0.0 }
 0x22d   : > { %v930_v43 = vpack.c.bf16 %v914_v40, %v912_v39 }
 0x22e   : > { %v931_v44 = vpack.c.bf16 %v915_v42, %v913_v41 }
 0x230   : > { %1155 = vmatprep.mubr.bf16.mxu0 %v931_v44 }
 0x231   : > { %1156 = vmatmul.mubr.bf16.gmra.mrb[60].mxu0 %v930_v43 }
 0x2cc   : > { %v1366_v45 = vpop.f32.mrb[32].mxu0 }
 0x2cd   : > { %v1367_v46 = vpop.f32.mrb[33].mxu0 }
 0x2ce   : > { %v1368_v47 = vadd.f32 %v1367_v46, %v1366_v45  ;;  %v1369_v56 = vpop.f32.mrb[34].mxu0 }
 0x2cf   : > { %v1370_v48 = vpop.f32.mrb[35].mxu0 }
 0x2d0   : > { %v1102_v49 = vadd.f32 %v1368_v47, %v1944_v55  ;;  %v1371_v50 = vadd.f32 %v1370_v48, %v1369_v56 }
 0x2d2   : > { %1164 = vst [vmem:[%s1947_s20] sm:$0xff] %v1102_v49  ;;  %v1105_v51 = vadd.f32 %v1371_v50, %v1944_v55 }
 0x2d4   : > { %1165 = vst [vmem:[%s1947_s20 + $0x8] sm:$0xff] %v1105_v51  ;;  %v1372_v52 = vpop.f32.mrb[36].mxu0 }
 0x2d5   : > { %v1373_v53 = vpop.f32.mrb[37].mxu0 }
 0x2d6   : > { %v1374_v54 = vadd.f32 %v1373_v53, %v1372_v52  ;;  %v1375_v63 = vpop.f32.mrb[38].mxu0 }
 0x2d7   : > { %v1376_v0 = vpop.f32.mrb[39].mxu0 }
 0x2d8   : > { %v1110_v57 = vadd.f32 %v1374_v54, %v1944_v55  ;;  %v1377_v58 = vadd.f32 %v1376_v0, %v1375_v63 }
 0x2da   : > { %1166 = vst [vmem:[%s1947_s20 + $0x10] sm:$0xff] %v1110_v57  ;;  %v1113_v61 = vadd.f32 %v1377_v58, %v1944_v55 }
 0x2dc   : > { %1167 = vst [vmem:[%s1947_s20 + $0x18] sm:$0xff] %v1113_v61  ;;  %v1378_v1 = vpop.f32.mrb[40].mxu0 }
 0x2dd   : > { %v1379_v2 = vpop.f32.mrb[41].mxu0 }
 0x2de   : > { %v1380_v3 = vadd.f32 %v1379_v2, %v1378_v1  ;;  %v1381_v4 = vpop.f32.mrb[42].mxu0 }
 0x2df   : > { %v1382_v5 = vpop.f32.mrb[43].mxu0 }
 0x2e0   : > { %v1118_v6 = vadd.f32 %v1380_v3, %v1944_v55  ;;  %v1383_v7 = vadd.f32 %v1382_v5, %v1381_v4 }
 0x2e2   : > { %1168 = vst [vmem:[%s1947_s20 + $0x20] sm:$0xff] %v1118_v6  ;;  %v1121_v60 = vadd.f32 %v1383_v7, %v1944_v55 }
 0x2e4   : > { %1169 = vst [vmem:[%s1947_s20 + $0x28] sm:$0xff] %v1121_v60  ;;  %v1384_v8 = vpop.f32.mrb[44].mxu0 }
 0x2e5   : > { %v1385_v9 = vpop.f32.mrb[45].mxu0 }
 0x2e6   : > { %v1386_v59 = vadd.f32 %v1385_v9, %v1384_v8  ;;  %v1387_v62 = vpop.f32.mrb[46].mxu0 }
 0x2e7   : > { %v1388_v10 = vpop.f32.mrb[47].mxu0 }
 0x2e8   : > { %v1126_v11 = vadd.f32 %v1386_v59, %v1944_v55  ;;  %v1389_v12 = vadd.f32 %v1388_v10, %v1387_v62 }
 0x2ea   : > { %1170 = vst [vmem:[%s1947_s20 + $0x30] sm:$0xff] %v1126_v11  ;;  %v1129_v13 = vadd.f32 %v1389_v12, %v1944_v55 }
 0x2ec   : > { %1171 = vst [vmem:[%s1947_s20 + $0x38] sm:$0xff] %v1129_v13  ;;  %v1390_v14 = vpop.f32.mrb[48].mxu0 }
 0x2ed   : > { %v1391_v15 = vpop.f32.mrb[49].mxu0 }
 0x2ee   : > { %v1392_v16 = vadd.f32 %v1391_v15, %v1390_v14  ;;  %v1393_v17 = vpop.f32.mrb[50].mxu0 }
 0x2ef   : > { %v1394_v18 = vpop.f32.mrb[51].mxu0 }
 0x2f0   : > { %v1134_v19 = vadd.f32 %v1392_v16, %v1944_v55  ;;  %v1395_v20 = vadd.f32 %v1394_v18, %v1393_v17 }
 0x2f2   : > { %1172 = vst [vmem:[%s1947_s20 + $0x40] sm:$0xff] %v1134_v19  ;;  %v1137_v21 = vadd.f32 %v1395_v20, %v1944_v55 }
 0x2f4   : > { %1173 = vst [vmem:[%s1947_s20 + $0x48] sm:$0xff] %v1137_v21  ;;  %v1396_v22 = vpop.f32.mrb[52].mxu0 }
 0x2f5   : > { %v1397_v23 = vpop.f32.mrb[53].mxu0 }
 0x2f6   : > { %v1398_v24 = vadd.f32 %v1397_v23, %v1396_v22  ;;  %v1399_v25 = vpop.f32.mrb[54].mxu0 }
 0x2f7   : > { %v1400_v26 = vpop.f32.mrb[55].mxu0 }
 0x2f8   : > { %v1142_v27 = vadd.f32 %v1398_v24, %v1944_v55  ;;  %v1401_v28 = vadd.f32 %v1400_v26, %v1399_v25 }
 0x2fa   : > { %1174 = vst [vmem:[%s1947_s20 + $0x50] sm:$0xff] %v1142_v27  ;;  %v1145_v29 = vadd.f32 %v1401_v28, %v1944_v55 }
 0x2fc   : > { %1175 = vst [vmem:[%s1947_s20 + $0x58] sm:$0xff] %v1145_v29  ;;  %v1402_v30 = vpop.f32.mrb[56].mxu0 }
 0x2fd   : > { %v1403_v31 = vpop.f32.mrb[57].mxu0 }
 0x2fe   : > { %v1404_v32 = vadd.f32 %v1403_v31, %v1402_v30  ;;  %v1405_v33 = vpop.f32.mrb[58].mxu0 }
 0x2ff   : > { %v1406_v34 = vpop.f32.mrb[59].mxu0 }
 0x300   : > { %v1150_v35 = vadd.f32 %v1404_v32, %v1944_v55  ;;  %v1407_v36 = vadd.f32 %v1406_v34, %v1405_v33 }
 0x302   : > { %1176 = vst [vmem:[%s1947_s20 + $0x60] sm:$0xff] %v1150_v35  ;;  %v1153_v37 = vadd.f32 %v1407_v36, %v1944_v55 }
 0x304   : > { %1177 = vst [vmem:[%s1947_s20 + $0x68] sm:$0xff] %v1153_v37  ;;  %v1408_v38 = vpop.f32.mrb[60].mxu0 }
 0x305   : > { %v1409_v39 = vpop.f32.mrb[61].mxu0 }
 0x306   : > { %v1410_v40 = vadd.f32 %v1409_v39, %v1408_v38  ;;  %v1411_v41 = vpop.f32.mrb[62].mxu0 }
 0x307   : > { %v1412_v42 = vpop.f32.mrb[63].mxu0 }
 0x308   : > { %v1158_v43 = vadd.f32 %v1410_v40, %v1944_v55  ;;  %v1413_v44 = vadd.f32 %v1412_v42, %v1411_v41 }
 0x30a   : > { %1178 = vst [vmem:[%s1947_s20 + $0x70] sm:$0xff] %v1158_v43  ;;  %v1161_v45 = vadd.f32 %v1413_v44, %v1944_v55 }
 0x30c   : > { %1179 = vst [vmem:[%s1947_s20 + $0x78] sm:$0xff] %v1161_v45 }
 0x30d   : > { %1582 = shalt.err (!%p1579_p7)
}
 0x30e   : > { %s1583_s16 = scalar_lea.hbm %s1982_s8, 2048  ;;  %s1587_s13 = scalar_lea.hbm %s2039_s7, 4096 }
 0x30f   : > { %p1584_p8 = scmp.ne.s32.totalorder %s1982_s8, %s1583_s16  ;;  %p1588_p1 = scmp.lt.u32.totalorder %s1982_s8, %s2039_s7 }
 0x310   : > { %p1589_p0 = scmp.lt.u32.totalorder %s1587_s13, %s1583_s16  ;;  %p1591_p6 = scmp.lt.u32.totalorder %s1583_s16, %s1982_s8 }
 0x311   : > { %p1585_p11 = pnand %p1584_p8, %p2050_p9 }
 0x312   : > { %p1590_p5 = por %p1589_p0, %p1588_p1 }
 0x313   : > { %p1586_p13 = pneg %p1585_p11 }
 0x314   : > { %p1592_p10 = por %p1591_p6, %p1590_p5 }
 0x316   : > { %p1593_p12 = pnand %p1592_p10, %p1586_p13 }
 0x318   : > { %1596 = shalt.err (!%p1593_p12)
}
 0x319   : > { %s1642_s23 = smov 128   ;;  %s1643_s29 = smov 8  }
 0x31a   : > { %1418 = dma.vmem_to_hbm [thread:$0]  (%p2050_p9), %s1984_s22, 2048, %s1982_s8, %s1991_s28, %s1642_s23, %s1642_s23, %s1643_s29  }
 0x31b PF: > { %p1430_p2 = scmp.ge.s32.totalorder %s1635_s27, 2  ;;  %s1209_s9 = sand.u32 1, %s1623_s24  }
 0x31c   : > { %p2051_p3 = scmp.ne.s32.totalorder %s2044_s12, 0  ;;  %s1210_s14 = scalar_lea.sflag [#allocation4], %s1209_s9 }
 0x31e   : > { %p1425_p4 = pnand %p1430_p2, %p2051_p3 }
 0x320   : > { %1618 = dma.done.wait (!%p1425_p4), %s1210_s14, 2048  }
 0x321   : > { %1620 = vsyncadd (!%p1425_p4), %s1210_s14, 4294965248  ;;  %p18_p7 = scmp.ge.s32.totalorder %s1709_s30, 4   ;;  %s2052_s24 = smov %s1627_s25 }
 0x322   : > { %s2053_s25 = smov %s1631_s26  ;;  %s2054_s26 = smov %s1720_s10 }
 0x323   : > { %s2055_s27 = smov %s1709_s30  ;;  %20 = sbr.rel (!%p18_p7) target bundleno = 4 (0x4), region = 88 }
 0x32a   :  { %1215 = vsyncpa [#allocation3], 1 }
 0x32b   :  { %1217 = vsyncpa [#allocation3 + $0x1], 1 }
 0x32c   :  { %1218 = vsyncpa [#allocation4], 1 }
 0x32d   :  { %1220 = vsyncpa [#allocation4 + $0x1], 1 }

</bundles_post_ra>
